<compile_context>
chip_gen: v7x
topology: tpu7x:2x2x1
jax: 0.10.0
libtpu: 0.0.40
codegen_flags: <defaults>
</compile_context>

<pallas_src>
import functools

import jax
import jax.numpy as jnp
import numpy as np
from jax.experimental import pallas as pl
from jax.experimental.pallas import tpu as pltpu

_LANE = 128
_SUBLANE = 8
_TILE_BUDGET_BYTES = 4 * 1024 * 1024  # per x block; 2*in + 2*out + pe ~ 17 MiB

# murmur3 finalizer constants, expressed as signed int32 (two's complement).
_M1 = 0x85EBCA6B - (1 << 32)
_M2 = 0xC2B2AE35 - (1 << 32)
_GOLDEN = 0x9E3779B1 - (1 << 32)


def make_pe_table(e_dim: int, max_len: int = 512) -> jnp.ndarray:
    """Deterministic sinusoidal PE table, identical to the torch __init__."""
    position = jnp.arange(0, max_len, dtype=jnp.float32)[:, None]          # (L, 1)
    div_term = 10000.0 ** (jnp.arange(0.0, e_dim, 2.0) / e_dim)            # (E/2,)
    pe = jnp.zeros((max_len, e_dim), dtype=jnp.float32)
    pe = pe.at[:, 0::2].set(jnp.sin(position / div_term))
    pe = pe.at[:, 1::2].set(jnp.cos(position / div_term))
    return pe                                                              # (L, E)


def _lshr32(v, k: int):
    """Logical right shift of int32 by static k (emulated with arith >> + mask)."""
    return (v >> k) & jnp.int32((1 << (32 - k)) - 1)


def _mix32(h):
    """murmur3 finalizer on int32 (bit-identical to the uint32 version)."""
    h = h ^ _lshr32(h, 16)
    h = h * jnp.int32(_M1)
    h = h ^ _lshr32(h, 13)
    h = h * jnp.int32(_M2)
    h = h ^ _lshr32(h, 16)
    return h


def _pe_dropout_kernel(seed_ref, x_ref, pe_ref, o_ref, *,
                       p: float, training: bool, f_total: int,
                       block_rows: int, block_cols: int):
    # x_ref:  (block_rows, block_cols) tile of the flattened (B, S*E) input
    # pe_ref: (1, block_cols)          matching slice of the flattened PE row
    if training and p >= 1.0:
        # Drop everything (avoids threshold overflow for p -> 1).
        o_ref[...] = jnp.zeros_like(o_ref)
        return

    x = x_ref[...].astype(jnp.float32)
    pe = pe_ref[...].astype(jnp.float32)     # sublane-broadcast add, no reshape
    y = x + pe

    if training and p > 0.0:
        jc = pl.program_id(0)                # column-tile index (outer grid axis)
        ir = pl.program_id(1)                # row-tile index   (inner grid axis)
        shape = (block_rows, block_cols)
        row = jax.lax.broadcasted_iota(jnp.int32, shape, 0) + ir * block_rows
        col = jax.lax.broadcasted_iota(jnp.int32, shape, 1) + jc * block_cols
        # Unique-per-element counter -> stateless hash PRNG. Mask is independent
        # of tiling and grid order, so the grid is megacore-safe ("parallel").
        n = row * f_total + col
        h = _mix32(n ^ (seed_ref[0] * jnp.int32(_GOLDEN)))
        u = h & jnp.int32(0x7FFFFFFF)                         # uniform in [0, 2^31)
        thresh = min(int(round(p * float(1 << 31))), (1 << 31) - 1)
        keep = u >= jnp.int32(thresh)                         # P(drop) ~= p
        y = jnp.where(keep, y * jnp.float32(1.0 / (1.0 - p)), jnp.float32(0.0))
        # TODO(synk): mask will not match torch.nn.Dropout bit-for-bit (different RNG).

    o_ref[...] = y.astype(o_ref.dtype)


def _choose_tiles(n_rows: int, n_cols: int, itemsize: int):
    """Largest lane-dense tiles that keep one block under the VMEM budget."""
    max_cols = max(_LANE,
                   (_TILE_BUDGET_BYTES // (_SUBLANE * itemsize)) // _LANE * _LANE)
    tc = n_cols if n_cols <= max_cols else max_cols            # full or k*128
    rows_fit = max(1, _TILE_BUDGET_BYTES // (tc * itemsize))
    if n_rows <= rows_fit:
        tr = n_rows                                            # full height
    else:
        tr = max(_SUBLANE, (rows_fit // _SUBLANE) * _SUBLANE)  # multiple of 8
    return tr, tc


def positional_encoding(x: jnp.ndarray,
                        pe_table: jnp.ndarray,
                        *,
                        p: float = 0.1,
                        training: bool = True,
                        seed: int = 0) -> jnp.ndarray:
    """x: (B, S, E). pe_table: (max_len, E). Returns dropout(x + pe[:S])."""
    B, S, E = x.shape
    F = S * E
    x2 = x.reshape(B, F)                       # lane-dense 2D view (free reshape)
    pe2 = pe_table[:S, :].reshape(1, F)        # flattened PE row, same column order

    tr, tc = _choose_tiles(B, F, jnp.dtype(x.dtype).itemsize)
    grid = (pl.cdiv(F, tc), pl.cdiv(B, tr))    # cols outer, rows inner -> PE resident
    seed_arr = jnp.asarray([seed], dtype=jnp.int32)

    kernel = functools.partial(
        _pe_dropout_kernel, p=float(p), training=bool(training),
        f_total=F, block_rows=tr, block_cols=tc)

    out2 = pl.pallas_call(
        kernel,
        out_shape=jax.ShapeDtypeStruct((B, F), x.dtype),
        grid_spec=pltpu.PrefetchScalarGridSpec(
            num_scalar_prefetch=1,
            grid=grid,
            in_specs=[
                pl.BlockSpec((tr, tc), lambda jc, ir, seed: (ir, jc)),
                pl.BlockSpec((1, tc), lambda jc, ir, seed: (0, jc)),
            ],
            out_specs=pl.BlockSpec((tr, tc), lambda jc, ir, seed: (ir, jc)),
        ),
        compiler_params=pltpu.CompilerParams(
            dimension_semantics=("parallel", "parallel"),
            vmem_limit_bytes=32 * 1024 * 1024,
        ),
    )(seed_arr, x2, pe2)
    return out2.reshape(B, S, E)


if __name__ == "__main__":
    B, S, E = 2, 8, 32
    key = jax.random.PRNGKey(0)
    x = jax.random.normal(key, (B, S, E), dtype=jnp.float32)
    pe_table = make_pe_table(E, max_len=512)

    # Eval mode (dropout is identity): exact math vs reference.
    y_eval = jax.block_until_ready(
        positional_encoding(x, pe_table, p=0.1, training=False))
    ref = np.asarray(x) + np.asarray(pe_table[:S, :])[None, :, :]
    np.testing.assert_allclose(np.asarray(y_eval), ref, rtol=1e-6, atol=1e-6)

    # Train mode: every element is either 0 (dropped) or (x+pe)/(1-p) (kept).
    y_train = jax.block_until_ready(
        positional_encoding(x, pe_table, p=0.1, training=True, seed=42))
    assert y_train.shape == (B, S, E) and y_train.dtype == jnp.float32
    yt = np.asarray(y_train)
    scaled = ref / (1.0 - 0.1)
    ok = (np.isclose(yt, 0.0, atol=1e-6)
          | np.isclose(yt, scaled, rtol=1e-5, atol=1e-6))
    assert ok.all()
    nonzero_ref = ~np.isclose(scaled, 0.0, atol=1e-6)
    dropped = np.isclose(yt, 0.0, atol=1e-6) & nonzero_ref
    kept = np.isclose(yt, scaled, rtol=1e-5, atol=1e-6) & nonzero_ref
    assert dropped.sum() > 0 and kept.sum() > 0   # mask has both states

    print("KERNEL_OK")
</pallas_src>

<mosaic_0001>
module attributes {stable_mosaic.version = 11 : i64} {
  func.func @_pe_dropout_kernel(%arg0: i32, %arg1: i32, %arg2: memref<1xi32, #tpu.memory_space<smem>>, %arg3: memref<2x256xf32, #tpu.memory_space<vmem>>, %arg4: memref<1x256xf32, #tpu.memory_space<vmem>>, %arg5: memref<2x256xf32, #tpu.memory_space<vmem>>) attributes {dimension_semantics = [#tpu.dimension_semantics<parallel>, #tpu.dimension_semantics<parallel>], iteration_bounds = array<i64: 1, 1>, scalar_prefetch = 1 : i64, scratch_operands = 0 : i64, tpu.core_type = #tpu.core_type<tc>, window_params = [{transform_indices = @transform_0, window_bounds = array<i64: 2, 256>}, {transform_indices = @transform_1, window_bounds = array<i64: 1, 256>}, {transform_indices = @transform_2, window_bounds = array<i64: 2, 256>}]} {
    %c0 = arith.constant 0 : index
    %c0_0 = arith.constant 0 : index
    %0 = vector.load %arg3[%c0, %c0_0] : memref<2x256xf32, #tpu.memory_space<vmem>>, vector<2x256xf32>
    %c0_1 = arith.constant 0 : index
    %c0_2 = arith.constant 0 : index
    %1 = vector.load %arg4[%c0_1, %c0_2] : memref<1x256xf32, #tpu.memory_space<vmem>>, vector<1x256xf32>
    %2 = vector.broadcast %1 : vector<1x256xf32> to vector<2x256xf32>
    %3 = arith.addf %0, %2 : vector<2x256xf32>
    %c0_3 = arith.constant 0 : index
    %c0_4 = arith.constant 0 : index
    %4 = vector.load %arg5[%c0_3, %c0_4] : memref<2x256xf32, #tpu.memory_space<vmem>>, vector<2x256xf32>
    tpu.vector_store %arg5[%c0_3, %c0_4], %3 {strides = array<i32>} : memref<2x256xf32, #tpu.memory_space<vmem>>, vector<2x256xf32>,
    return
  }
  func.func @transform_0(%arg0: i32, %arg1: i32, %arg2: memref<1xi32, #tpu.memory_space<smem>>) -> (i32, i32) {
    %c0_i32 = arith.constant 0 : i32
    return %arg1, %arg0 : i32, i32
  }
  func.func @transform_1(%arg0: i32, %arg1: i32, %arg2: memref<1xi32, #tpu.memory_space<smem>>) -> (i32, i32) {
    %c0_i32 = arith.constant 0 : i32
    %c0_i32_0 = arith.constant 0 : i32
    return %c0_i32, %arg0 : i32, i32
  }
  func.func @transform_2(%arg0: i32, %arg1: i32, %arg2: memref<1xi32, #tpu.memory_space<smem>>) -> (i32, i32) {
    %c0_i32 = arith.constant 0 : i32
    return %arg1, %arg0 : i32, i32
  }
}

</mosaic_0001>

<bundles_post_ra>
// kernel: tpu_custom_call.1
= control target key start
LH: loop header
LB: loop body
LE: loop exit
PB: predicated region body
PF: predicated region fallthrough
CT: control target
= control target key end

     0   :  { %9 = vsyncpa [#allocation5], 0  ;;  %s164_s0 = inlined_call_operand.<no memory space> [shape: s32[1], index: 0, kind: input, shape index: {}]   ;;  %s165_s1 = inlined_call_operand.hbm [shape: f32[2,256], index: 1, kind: input, shape index: {}]   ;;  %s166_s2 = inlined_call_operand.vmem [shape: f32[1,256], index: 2, kind: input, shape index: {}]   ;;  %s167_s3 = inlined_call_operand.hbm [shape: f32[2,256], index: 3, kind: output, shape index: {}]  }
   0x1   :  { %10 = vsyncpa [#allocation6], 0  ;;  %s114_s12 = smov [#allocation4]   ;;  %s66_s16 = scalar_lea.hbm %s165_s1, 64 }
   0x2   :  { %s17_s13 = sshll.u32 %s114_s12, 4  ;;  %p67_p0 = scmp.ne.s32.totalorder %s165_s1, %s66_s16  ;;  %s18_s13 = int_to_ptr.vmem [resolvable:$true] %s17_s13 }
   0x3   :  { %p70_p1 = scmp.lt.u32.totalorder %s66_s16, %s165_s1 }
   0x5   :  { %p72_p2 = pnand %p70_p1, %p67_p0 }
   0x7   :  { %75 = shalt.err (!%p72_p2)
}
   0x8   :  { %s76_s20 = scalar_lea.vmem %s18_s13, 64  ;;  %p81_p4 = scmp.lt.s32.totalorder %s18_s13, %s18_s13 }
   0x9   :  { %p77_p3 = scmp.ne.s32.totalorder %s18_s13, %s76_s20  ;;  %p82_p5 = scmp.lt.s32.totalorder %s76_s20, %s76_s20 }
   0xb   :  { %p83_p6 = por %p82_p5, %p81_p4 }
   0xd   :  { %p84_p7 = pnand %p83_p6, %p77_p3 }
   0xf   :  { %87 = shalt.err (!%p84_p7)
}
  0x10   :  { %20 = dma.hbm_to_vmem [thread:$0]  %s165_s1, 64, %s18_s13, [#allocation5]  }
  0x11   :  { %110 = dma.done.wait [#allocation5], 64  }
  0x12   :  { %111 = vsyncadd [#allocation5], 4294967232  ;;  %v29_v0 = vlaneseq  ;;  %v115_v1 = vmov 1983009808   ;;  %v27_v7 = vld [vmem:[%s166_s2] sm:$0x3] }
  0x13   :  { %v39_v2 = vunpack.c.l.s4 %v115_v1  ;;  %v26_v12 = vld [vmem:[#allocation4] sm:$0xf]  ;;  %s116_s25 = smov [#allocation7]  }
  0x14   :  { %v30_v3 = vshrl.u32 %v29_v0, 7  ;;  %s54_s1 = sshll.u32 %s116_s25, 4  ;;  %s55_s1 = int_to_ptr.vmem [resolvable:$true] %s54_s1 }
  0x15   :  { %v40_v6 = vunpack.c.0.s8 %v39_v2  ;;  %s88_s26 = scalar_lea.vmem %s55_s1, 64  ;;  %p93_p9 = scmp.lt.s32.totalorder %s55_s1, %s55_s1 }
  0x16   :  { %v31_v4 = vsub.s32 0, %v30_v3  ;;  %v35_v5 = vsub.s32 1, %v30_v3  ;;  %p89_p8 = scmp.ne.s32.totalorder %s55_s1, %s88_s26  ;;  %p94_p10 = scmp.lt.s32.totalorder %s88_s26, %s88_s26 }
  0x17   :  { %v43_v10 = vsub.s32 %v40_v6, %v30_v3 }
  0x18   :  { %v32_v8 = vrot.slane %v27_v7, %v31_v4  ;;  %v36_v9 = vrot.slane %v27_v7, %v35_v5  ;;  %p95_p11 = por %p94_p10, %p93_p9 }
  0x1a   :  { %v37_v11 = vcombine.low %v32_v8, %v36_v9  ;;  %p96_p12 = pnand %p95_p11, %p89_p8 }
  0x1c   :  { %v44_v13 = vrot.slane %v37_v11, %v43_v10 }
  0x1e   :  { %v46_v14 = vadd.f32 %v44_v13, %v26_v12 }
  0x20   :  { %47 = vst [vmem:[#allocation7] sm:$0xf] %v46_v14 }
  0x21   :  { %99 = shalt.err (!%p96_p12)
}
  0x22   :  { %s100_s28 = scalar_lea.hbm %s167_s3, 64 }
  0x23   :  { %p101_p13 = scmp.ne.s32.totalorder %s167_s3, %s100_s28  ;;  %p104_p0 = scmp.lt.u32.totalorder %s100_s28, %s167_s3 }
  0x25   :  { %p106_p1 = pnand %p104_p0, %p101_p13 }
  0x27   :  { %109 = shalt.err (!%p106_p1)
}
  0x28   :  { %57 = dma.vmem_to_hbm [thread:$0]  %s55_s1, 64, %s167_s3, [#allocation6]  }
  0x29   :  { %112 = dma.done.wait [#allocation6], 64  }
  0x2a   :  { %113 = vsyncadd [#allocation6], 4294967232 }
  0x2b   :  { %61 = vsyncpa [#allocation5], 1 }
  0x2c   :  { %62 = vsyncpa [#allocation6], 1 }

</bundles_post_ra>
